<compile_context>
chip_gen: v5e
topology: v5e:2x2
jax: 0.10.0
libtpu: 0.0.40
codegen_flags: <defaults>
</compile_context>

<pallas_src>
from functools import partial

import jax
import jax.numpy as jnp
from jax.experimental import pallas as pl
from jax.experimental.pallas import tpu as pltpu


# ----------------------------- Pallas kernel ------------------------------ #
def _attention_kernel(x_ref, wqkv_ref, wp_ref, bp_ref, o_ref, attn_scratch,
                      *, num_heads: int, tokens_per_batch: int):
    """One grid step = one batch-tile of `bb` batch elements (R = bb*N rows).

    x_ref       : (R, C)        VMEM, input rows (batch folded into rows)
    wqkv_ref    : (C, 3C)       VMEM, bf16, fused [Wq^T | Wk^T | Wv^T]
    wp_ref      : (C, C_pad)    VMEM, bf16, proj weight^T padded to lane-dense width
    bp_ref      : (1, C_pad)    VMEM, f32, proj bias (zero-padded)
    o_ref       : (R, C_pad)    VMEM, output (lane-dense, unmasked stores)
    attn_scratch: (R, C)        VMEM scratch, bf16, concatenated head outputs
    """
    n = tokens_per_batch
    r, c = x_ref.shape
    d = c // num_heads
    num_b = r // n
    scale = 1.0 / (d ** 0.5)

    # Fused QKV projection on the MXU: bf16 inputs, f32 accumulation.
    x_bf = x_ref[...].astype(jnp.bfloat16)                              # (R, C)
    qkv = jnp.dot(x_bf, wqkv_ref[...],
                  preferred_element_type=jnp.float32)                   # (R, 3C) f32

    # Apply the softmax scale once to q (cheaper than scaling every (N,N) score).
    q = qkv[:, :c] * scale                                              # (R, C) f32
    k = qkv[:, c:2 * c]                                                 # (R, C) f32
    v = qkv[:, 2 * c:]                                                  # (R, C) f32

    # Per-(batch, head) scaled dot-product attention; static slices, heads unrolled.
    for b in range(num_b):
        r0 = b * n
        for h in range(num_heads):
            c0 = h * d
            qh = q[r0:r0 + n, c0:c0 + d].astype(jnp.bfloat16)           # (N, D)
            kh = k[r0:r0 + n, c0:c0 + d].astype(jnp.bfloat16)           # (N, D)
            vh = v[r0:r0 + n, c0:c0 + d].astype(jnp.bfloat16)           # (N, D)

            s = jnp.dot(qh, kh.T, preferred_element_type=jnp.float32)   # (N, N) f32
            s = s - jnp.max(s, axis=-1, keepdims=True)
            p = jnp.exp(s)                                              # f32 softmax
            p = p * pl.reciprocal(jnp.sum(p, axis=-1, keepdims=True),
                                  approx=True)
            oh = jnp.dot(p.astype(jnp.bfloat16), vh,
                         preferred_element_type=jnp.float32)            # (N, D) f32
            # Write head output into the scratch at its fixed column offset.
            attn_scratch[r0:r0 + n, c0:c0 + d] = oh.astype(jnp.bfloat16)

    # Output projection (bf16 MXU, f32 accumulation) + bias; lane-dense store.
    out = jnp.dot(attn_scratch[...], wp_ref[...],
                  preferred_element_type=jnp.float32) + bp_ref[...]     # (R, C_pad)
    o_ref[...] = out.astype(o_ref.dtype)


# ------------------------------- Wrapper ----------------------------------- #
def attention_pallas(x, wq, wk, wv, wp, bp, *, num_heads: int):
    """x: (B, N, C); w*: (C_out, C_in) PyTorch layout; bp: (C,)."""
    B, N, C = x.shape
    assert C % num_heads == 0

    # Lane-dense padded output width (multiple of 128) so the final vst is unmasked.
    C_pad = ((C + 127) // 128) * 128

    # Fused QKV weight, pre-transposed to (in, out) and cast to bf16 for the MXU.
    wqkv_t = jnp.concatenate([wq.T, wk.T, wv.T], axis=1).astype(jnp.bfloat16)  # (C, 3C)

    # Proj weight^T / bias, zero-padded along the output dim to C_pad.
    wp_t = wp.T.astype(jnp.bfloat16)                                            # (C, C)
    if C_pad != C:
        wp_t = jnp.pad(wp_t, ((0, 0), (0, C_pad - C)))
        bp_p = jnp.pad(bp, (0, C_pad - C))
    else:
        bp_p = bp
    bp_p = bp_p.reshape(1, C_pad).astype(jnp.float32)

    # Fold batch into matmul rows; keep (up to) 2 "parallel" grid steps so both
    # v7x TensorCores get work (on v5e/v6e the grid is a serial loop anyway).
    num_blocks = 2 if (B >= 2 and B % 2 == 0) else 1
    bb = B // num_blocks
    R = bb * N
    x2 = x.reshape(B * N, C)

    kernel = partial(_attention_kernel, num_heads=num_heads, tokens_per_batch=N)

    grid_spec = pltpu.PrefetchScalarGridSpec(
        num_scalar_prefetch=0,
        grid=(num_blocks,),
        in_specs=[
            pl.BlockSpec((R, C), lambda i: (i, 0)),          # x rows (batch-tile)
            pl.BlockSpec((C, 3 * C), lambda i: (0, 0)),      # fused Wqkv^T (bf16)
            pl.BlockSpec((C, C_pad), lambda i: (0, 0)),      # Wproj^T, padded (bf16)
            pl.BlockSpec((1, C_pad), lambda i: (0, 0)),      # bproj, padded (f32)
        ],
        out_specs=pl.BlockSpec((R, C_pad), lambda i: (i, 0)),
        scratch_shapes=[pltpu.VMEM((R, C), jnp.bfloat16)],   # concatenated head outs
    )

    out = pl.pallas_call(
        kernel,
        out_shape=jax.ShapeDtypeStruct((B * N, C_pad), x.dtype),
        grid_spec=grid_spec,
        compiler_params=pltpu.CompilerParams(
            dimension_semantics=("parallel",)),
    )(x2, wqkv_t, wp_t, bp_p)

    # Drop the lane padding and restore (B, N, C).
    return out[:, :C].reshape(B, N, C)


# --------------------------- Pure-JAX reference ----------------------------- #
def attention_ref(x, wq, wk, wv, wp, bp, *, num_heads: int):
    B, N, C = x.shape
    D = C // num_heads
    q = (x @ wq.T).reshape(B, N, num_heads, D).transpose(0, 2, 1, 3)
    k = (x @ wk.T).reshape(B, N, num_heads, D).transpose(0, 2, 1, 3)
    v = (x @ wv.T).reshape(B, N, num_heads, D).transpose(0, 2, 1, 3)
    scale = 1.0 / (D ** 0.5)
    s = jnp.einsum("bhnd,bhmd->bhnm", q, k) * scale
    p = jax.nn.softmax(s, axis=-1)
    o = jnp.einsum("bhnm,bhmd->bhnd", p, v)
    o = o.transpose(0, 2, 1, 3).reshape(B, N, C)
    return o @ wp.T + bp


# --------------------------------- Main ------------------------------------ #
if __name__ == "__main__":
    B, N, C = 2, 16, 64
    NUM_HEADS = 8  # head_dim = 8

    key = jax.random.PRNGKey(0)
    kx, kq, kk, kv, kp, kb = jax.random.split(key, 6)

    x = jax.random.normal(kx, (B, N, C), dtype=jnp.float32)
    # Deterministic parameter init (PyTorch layout: (out_features, in_features)).
    init_scale = 1.0 / (C ** 0.5)
    wq = jax.random.uniform(kq, (C, C), jnp.float32, -init_scale, init_scale)
    wk = jax.random.uniform(kk, (C, C), jnp.float32, -init_scale, init_scale)
    wv = jax.random.uniform(kv, (C, C), jnp.float32, -init_scale, init_scale)
    wp = jax.random.uniform(kp, (C, C), jnp.float32, -init_scale, init_scale)
    bp = jax.random.uniform(kb, (C,), jnp.float32, -init_scale, init_scale)

    out = attention_pallas(x, wq, wk, wv, wp, bp, num_heads=NUM_HEADS)
    out = jax.block_until_ready(out)

    ref = attention_ref(x, wq, wk, wv, wp, bp, num_heads=NUM_HEADS)
    assert out.shape == (B, N, C)
    # Tolerance loosened vs. the pure-f32 reference because the kernel feeds the
    # MXU bf16 inputs (f32 accumulation); expected error is ~1e-3.
    assert jnp.allclose(out, ref, atol=3e-2, rtol=3e-2), (
        f"max abs err = {jnp.max(jnp.abs(out - ref))}")

    print("KERNEL_OK")
</pallas_src>

<mosaic_0001>
module attributes {stable_mosaic.version = 11 : i64} {
  func.func @_attention_kernel(%arg0: i32, %arg1: memref<16x64xf32, #tpu.memory_space<vmem>>, %arg2: memref<64x192xbf16, #tpu.memory_space<vmem>>, %arg3: memref<64x128xbf16, #tpu.memory_space<vmem>>, %arg4: memref<1x128xf32, #tpu.memory_space<vmem>>, %arg5: memref<16x128xf32, #tpu.memory_space<vmem>>, %arg6: memref<16x64xbf16, #tpu.memory_space<vmem>>) attributes {dimension_semantics = [#tpu.dimension_semantics<parallel>], iteration_bounds = array<i64: 2>, scalar_prefetch = 0 : i64, scratch_operands = 1 : i64, tpu.core_type = #tpu.core_type<tc>, window_params = [{transform_indices = @transform_0, window_bounds = array<i64: 16, 64>}, {pipeline_mode = #tpu.pipeline_mode<synchronous>, transform_indices = @transform_1, window_bounds = array<i64: 64, 192>}, {pipeline_mode = #tpu.pipeline_mode<synchronous>, transform_indices = @transform_2, window_bounds = array<i64: 64, 128>}, {pipeline_mode = #tpu.pipeline_mode<synchronous>, transform_indices = @transform_3, window_bounds = array<i64: 1, 128>}, {transform_indices = @transform_4, window_bounds = array<i64: 16, 128>}]} {
    %c0 = arith.constant 0 : index
    %c0_0 = arith.constant 0 : index
    %0 = vector.load %arg1[%c0, %c0_0] : memref<16x64xf32, #tpu.memory_space<vmem>>, vector<16x64xf32>
    %1 = arith.truncf %0 : vector<16x64xf32> to vector<16x64xbf16>
    %c0_1 = arith.constant 0 : index
    %c0_2 = arith.constant 0 : index
    %2 = vector.load %arg2[%c0_1, %c0_2] : memref<64x192xbf16, #tpu.memory_space<vmem>>, vector<64x192xbf16>
    %cst = arith.constant dense<0.000000e+00> : vector<16x192xf32>
    %3 = tpu.matmul %1, %2, %cst {dimension_numbers = #tpu.dot_dimension_numbers<[1], [0], [0], [1], [0, 0, 1, 1], [], []>} : vector<16x64xbf16>, vector<64x192xbf16>, vector<16x192xf32> -> vector<16x192xf32>
    %4 = vector.extract_strided_slice %3 {offsets = [0, 0], sizes = [16, 64], strides = [1, 1]} : vector<16x192xf32> to vector<16x64xf32>
    %cst_3 = arith.constant 0.353553385 : f32
    %5 = vector.broadcast %cst_3 : f32 to vector<16x64xf32>
    %6 = arith.mulf %4, %5 : vector<16x64xf32>
    %7 = vector.extract_strided_slice %3 {offsets = [0, 64], sizes = [16, 64], strides = [1, 1]} : vector<16x192xf32> to vector<16x64xf32>
    %8 = vector.extract_strided_slice %3 {offsets = [0, 128], sizes = [16, 64], strides = [1, 1]} : vector<16x192xf32> to vector<16x64xf32>
    %9 = vector.extract_strided_slice %6 {offsets = [0, 0], sizes = [16, 8], strides = [1, 1]} : vector<16x64xf32> to vector<16x8xf32>
    %10 = arith.truncf %9 : vector<16x8xf32> to vector<16x8xbf16>
    %11 = vector.extract_strided_slice %7 {offsets = [0, 0], sizes = [16, 8], strides = [1, 1]} : vector<16x64xf32> to vector<16x8xf32>
    %12 = arith.truncf %11 : vector<16x8xf32> to vector<16x8xbf16>
    %13 = vector.extract_strided_slice %8 {offsets = [0, 0], sizes = [16, 8], strides = [1, 1]} : vector<16x64xf32> to vector<16x8xf32>
    %14 = arith.truncf %13 : vector<16x8xf32> to vector<16x8xbf16>
    %15 = tpu.transpose %12, [1, 0] : vector<16x8xbf16> -> vector<8x16xbf16>
    %cst_4 = arith.constant dense<0.000000e+00> : vector<16x16xf32>
    %16 = tpu.matmul %10, %15, %cst_4 {dimension_numbers = #tpu.dot_dimension_numbers<[1], [0], [0], [1], [0, 0, 1, 1], [], []>} : vector<16x8xbf16>, vector<8x16xbf16>, vector<16x16xf32> -> vector<16x16xf32>
    %cst_5 = arith.constant dense<0xFF800000> : vector<16xf32>
    %17 = vector.multi_reduction <maximumf>, %16, %cst_5 [1] : vector<16x16xf32> to vector<16xf32>
    %18 = vector.shape_cast %17 : vector<16xf32> to vector<16x1xf32>
    %19 = vector.broadcast %18 : vector<16x1xf32> to vector<16x16xf32>
    %20 = arith.subf %16, %19 : vector<16x16xf32>
    %21 = math.exp %20 : vector<16x16xf32>
    %cst_6 = arith.constant dense<0.000000e+00> : vector<16xf32>
    %22 = vector.multi_reduction <add>, %21, %cst_6 [1] : vector<16x16xf32> to vector<16xf32>
    %23 = vector.shape_cast %22 : vector<16xf32> to vector<16x1xf32>
    %24 = tpu.reciprocal %23 {approx = true} : vector<16x1xf32> -> vector<16x1xf32>
    %25 = vector.broadcast %24 : vector<16x1xf32> to vector<16x16xf32>
    %26 = arith.mulf %21, %25 : vector<16x16xf32>
    %27 = arith.truncf %26 : vector<16x16xf32> to vector<16x16xbf16>
    %cst_7 = arith.constant dense<0.000000e+00> : vector<16x8xf32>
    %28 = tpu.matmul %27, %14, %cst_7 {dimension_numbers = #tpu.dot_dimension_numbers<[1], [0], [0], [1], [0, 0, 1, 1], [], []>} : vector<16x16xbf16>, vector<16x8xbf16>, vector<16x8xf32> -> vector<16x8xf32>
    %29 = arith.truncf %28 : vector<16x8xf32> to vector<16x8xbf16>
    %c0_8 = arith.constant 0 : index
    %c0_9 = arith.constant 0 : index
    %30 = vector.load %arg6[%c0_8, %c0_9] : memref<16x64xbf16, #tpu.memory_space<vmem>>, vector<16x8xbf16>
    tpu.vector_store %arg6[%c0_8, %c0_9], %29 {strides = array<i32>} : memref<16x64xbf16, #tpu.memory_space<vmem>>, vector<16x8xbf16>,
    %31 = vector.extract_strided_slice %6 {offsets = [0, 8], sizes = [16, 8], strides = [1, 1]} : vector<16x64xf32> to vector<16x8xf32>
    %32 = arith.truncf %31 : vector<16x8xf32> to vector<16x8xbf16>
    %33 = vector.extract_strided_slice %7 {offsets = [0, 8], sizes = [16, 8], strides = [1, 1]} : vector<16x64xf32> to vector<16x8xf32>
    %34 = arith.truncf %33 : vector<16x8xf32> to vector<16x8xbf16>
    %35 = vector.extract_strided_slice %8 {offsets = [0, 8], sizes = [16, 8], strides = [1, 1]} : vector<16x64xf32> to vector<16x8xf32>
    %36 = arith.truncf %35 : vector<16x8xf32> to vector<16x8xbf16>
    %37 = tpu.transpose %34, [1, 0] : vector<16x8xbf16> -> vector<8x16xbf16>
    %cst_10 = arith.constant dense<0.000000e+00> : vector<16x16xf32>
    %38 = tpu.matmul %32, %37, %cst_10 {dimension_numbers = #tpu.dot_dimension_numbers<[1], [0], [0], [1], [0, 0, 1, 1], [], []>} : vector<16x8xbf16>, vector<8x16xbf16>, vector<16x16xf32> -> vector<16x16xf32>
    %cst_11 = arith.constant dense<0xFF800000> : vector<16xf32>
    %39 = vector.multi_reduction <maximumf>, %38, %cst_11 [1] : vector<16x16xf32> to vector<16xf32>
    %40 = vector.shape_cast %39 : vector<16xf32> to vector<16x1xf32>
    %41 = vector.broadcast %40 : vector<16x1xf32> to vector<16x16xf32>
    %42 = arith.subf %38, %41 : vector<16x16xf32>
    %43 = math.exp %42 : vector<16x16xf32>
    %cst_12 = arith.constant dense<0.000000e+00> : vector<16xf32>
    %44 = vector.multi_reduction <add>, %43, %cst_12 [1] : vector<16x16xf32> to vector<16xf32>
    %45 = vector.shape_cast %44 : vector<16xf32> to vector<16x1xf32>
    %46 = tpu.reciprocal %45 {approx = true} : vector<16x1xf32> -> vector<16x1xf32>
    %47 = vector.broadcast %46 : vector<16x1xf32> to vector<16x16xf32>
    %48 = arith.mulf %43, %47 : vector<16x16xf32>
    %49 = arith.truncf %48 : vector<16x16xf32> to vector<16x16xbf16>
    %cst_13 = arith.constant dense<0.000000e+00> : vector<16x8xf32>
    %50 = tpu.matmul %49, %36, %cst_13 {dimension_numbers = #tpu.dot_dimension_numbers<[1], [0], [0], [1], [0, 0, 1, 1], [], []>} : vector<16x16xbf16>, vector<16x8xbf16>, vector<16x8xf32> -> vector<16x8xf32>
    %51 = arith.truncf %50 : vector<16x8xf32> to vector<16x8xbf16>
    %c0_14 = arith.constant 0 : index
    %c8 = arith.constant 8 : index
    %52 = vector.load %arg6[%c0_14, %c8] : memref<16x64xbf16, #tpu.memory_space<vmem>>, vector<16x8xbf16>
    tpu.vector_store %arg6[%c0_14, %c8], %51 {strides = array<i32>} : memref<16x64xbf16, #tpu.memory_space<vmem>>, vector<16x8xbf16>,
    %53 = vector.extract_strided_slice %6 {offsets = [0, 16], sizes = [16, 8], strides = [1, 1]} : vector<16x64xf32> to vector<16x8xf32>
    %54 = arith.truncf %53 : vector<16x8xf32> to vector<16x8xbf16>
    %55 = vector.extract_strided_slice %7 {offsets = [0, 16], sizes = [16, 8], strides = [1, 1]} : vector<16x64xf32> to vector<16x8xf32>
    %56 = arith.truncf %55 : vector<16x8xf32> to vector<16x8xbf16>
    %57 = vector.extract_strided_slice %8 {offsets = [0, 16], sizes = [16, 8], strides = [1, 1]} : vector<16x64xf32> to vector<16x8xf32>
    %58 = arith.truncf %57 : vector<16x8xf32> to vector<16x8xbf16>
    %59 = tpu.transpose %56, [1, 0] : vector<16x8xbf16> -> vector<8x16xbf16>
    %cst_15 = arith.constant dense<0.000000e+00> : vector<16x16xf32>
    %60 = tpu.matmul %54, %59, %cst_15 {dimension_numbers = #tpu.dot_dimension_numbers<[1], [0], [0], [1], [0, 0, 1, 1], [], []>} : vector<16x8xbf16>, vector<8x16xbf16>, vector<16x16xf32> -> vector<16x16xf32>
    %cst_16 = arith.constant dense<0xFF800000> : vector<16xf32>
    %61 = vector.multi_reduction <maximumf>, %60, %cst_16 [1] : vector<16x16xf32> to vector<16xf32>
    %62 = vector.shape_cast %61 : vector<16xf32> to vector<16x1xf32>
    %63 = vector.broadcast %62 : vector<16x1xf32> to vector<16x16xf32>
    %64 = arith.subf %60, %63 : vector<16x16xf32>
    %65 = math.exp %64 : vector<16x16xf32>
    %cst_17 = arith.constant dense<0.000000e+00> : vector<16xf32>
    %66 = vector.multi_reduction <add>, %65, %cst_17 [1] : vector<16x16xf32> to vector<16xf32>
    %67 = vector.shape_cast %66 : vector<16xf32> to vector<16x1xf32>
    %68 = tpu.reciprocal %67 {approx = true} : vector<16x1xf32> -> vector<16x1xf32>
    %69 = vector.broadcast %68 : vector<16x1xf32> to vector<16x16xf32>
    %70 = arith.mulf %65, %69 : vector<16x16xf32>
    %71 = arith.truncf %70 : vector<16x16xf32> to vector<16x16xbf16>
    %cst_18 = arith.constant dense<0.000000e+00> : vector<16x8xf32>
    %72 = tpu.matmul %71, %58, %cst_18 {dimension_numbers = #tpu.dot_dimension_numbers<[1], [0], [0], [1], [0, 0, 1, 1], [], []>} : vector<16x16xbf16>, vector<16x8xbf16>, vector<16x8xf32> -> vector<16x8xf32>
    %73 = arith.truncf %72 : vector<16x8xf32> to vector<16x8xbf16>
    %c0_19 = arith.constant 0 : index
    %c16 = arith.constant 16 : index
    %74 = vector.load %arg6[%c0_19, %c16] : memref<16x64xbf16, #tpu.memory_space<vmem>>, vector<16x8xbf16>
    tpu.vector_store %arg6[%c0_19, %c16], %73 {strides = array<i32>} : memref<16x64xbf16, #tpu.memory_space<vmem>>, vector<16x8xbf16>,
    %75 = vector.extract_strided_slice %6 {offsets = [0, 24], sizes = [16, 8], strides = [1, 1]} : vector<16x64xf32> to vector<16x8xf32>
    %76 = arith.truncf %75 : vector<16x8xf32> to vector<16x8xbf16>
    %77 = vector.extract_strided_slice %7 {offsets = [0, 24], sizes = [16, 8], strides = [1, 1]} : vector<16x64xf32> to vector<16x8xf32>
    %78 = arith.truncf %77 : vector<16x8xf32> to vector<16x8xbf16>
    %79 = vector.extract_strided_slice %8 {offsets = [0, 24], sizes = [16, 8], strides = [1, 1]} : vector<16x64xf32> to vector<16x8xf32>
    %80 = arith.truncf %79 : vector<16x8xf32> to vector<16x8xbf16>
    %81 = tpu.transpose %78, [1, 0] : vector<16x8xbf16> -> vector<8x16xbf16>
    %cst_20 = arith.constant dense<0.000000e+00> : vector<16x16xf32>
    %82 = tpu.matmul %76, %81, %cst_20 {dimension_numbers = #tpu.dot_dimension_numbers<[1], [0], [0], [1], [0, 0, 1, 1], [], []>} : vector<16x8xbf16>, vector<8x16xbf16>, vector<16x16xf32> -> vector<16x16xf32>
    %cst_21 = arith.constant dense<0xFF800000> : vector<16xf32>
    %83 = vector.multi_reduction <maximumf>, %82, %cst_21 [1] : vector<16x16xf32> to vector<16xf32>
    %84 = vector.shape_cast %83 : vector<16xf32> to vector<16x1xf32>
    %85 = vector.broadcast %84 : vector<16x1xf32> to vector<16x16xf32>
    %86 = arith.subf %82, %85 : vector<16x16xf32>
    %87 = math.exp %86 : vector<16x16xf32>
    %cst_22 = arith.constant dense<0.000000e+00> : vector<16xf32>
    %88 = vector.multi_reduction <add>, %87, %cst_22 [1] : vector<16x16xf32> to vector<16xf32>
    %89 = vector.shape_cast %88 : vector<16xf32> to vector<16x1xf32>
    %90 = tpu.reciprocal %89 {approx = true} : vector<16x1xf32> -> vector<16x1xf32>
    %91 = vector.broadcast %90 : vector<16x1xf32> to vector<16x16xf32>
    %92 = arith.mulf %87, %91 : vector<16x16xf32>
    %93 = arith.truncf %92 : vector<16x16xf32> to vector<16x16xbf16>
    %cst_23 = arith.constant dense<0.000000e+00> : vector<16x8xf32>
    %94 = tpu.matmul %93, %80, %cst_23 {dimension_numbers = #tpu.dot_dimension_numbers<[1], [0], [0], [1], [0, 0, 1, 1], [], []>} : vector<16x16xbf16>, vector<16x8xbf16>, vector<16x8xf32> -> vector<16x8xf32>
    %95 = arith.truncf %94 : vector<16x8xf32> to vector<16x8xbf16>
    %c0_24 = arith.constant 0 : index
    %c24 = arith.constant 24 : index
    %96 = vector.load %arg6[%c0_24, %c24] : memref<16x64xbf16, #tpu.memory_space<vmem>>, vector<16x8xbf16>
    tpu.vector_store %arg6[%c0_24, %c24], %95 {strides = array<i32>} : memref<16x64xbf16, #tpu.memory_space<vmem>>, vector<16x8xbf16>,
    %97 = vector.extract_strided_slice %6 {offsets = [0, 32], sizes = [16, 8], strides = [1, 1]} : vector<16x64xf32> to vector<16x8xf32>
    %98 = arith.truncf %97 : vector<16x8xf32> to vector<16x8xbf16>
    %99 = vector.extract_strided_slice %7 {offsets = [0, 32], sizes = [16, 8], strides = [1, 1]} : vector<16x64xf32> to vector<16x8xf32>
    %100 = arith.truncf %99 : vector<16x8xf32> to vector<16x8xbf16>
    %101 = vector.extract_strided_slice %8 {offsets = [0, 32], sizes = [16, 8], strides = [1, 1]} : vector<16x64xf32> to vector<16x8xf32>
    %102 = arith.truncf %101 : vector<16x8xf32> to vector<16x8xbf16>
    %103 = tpu.transpose %100, [1, 0] : vector<16x8xbf16> -> vector<8x16xbf16>
    %cst_25 = arith.constant dense<0.000000e+00> : vector<16x16xf32>
    %104 = tpu.matmul %98, %103, %cst_25 {dimension_numbers = #tpu.dot_dimension_numbers<[1], [0], [0], [1], [0, 0, 1, 1], [], []>} : vector<16x8xbf16>, vector<8x16xbf16>, vector<16x16xf32> -> vector<16x16xf32>
    %cst_26 = arith.constant dense<0xFF800000> : vector<16xf32>
    %105 = vector.multi_reduction <maximumf>, %104, %cst_26 [1] : vector<16x16xf32> to vector<16xf32>
    %106 = vector.shape_cast %105 : vector<16xf32> to vector<16x1xf32>
    %107 = vector.broadcast %106 : vector<16x1xf32> to vector<16x16xf32>
    %108 = arith.subf %104, %107 : vector<16x16xf32>
    %109 = math.exp %108 : vector<16x16xf32>
    %cst_27 = arith.constant dense<0.000000e+00> : vector<16xf32>
    %110 = vector.multi_reduction <add>, %109, %cst_27 [1] : vector<16x16xf32> to vector<16xf32>
    %111 = vector.shape_cast %110 : vector<16xf32> to vector<16x1xf32>
    %112 = tpu.reciprocal %111 {approx = true} : vector<16x1xf32> -> vector<16x1xf32>
    %113 = vector.broadcast %112 : vector<16x1xf32> to vector<16x16xf32>
    %114 = arith.mulf %109, %113 : vector<16x16xf32>
    %115 = arith.truncf %114 : vector<16x16xf32> to vector<16x16xbf16>
    %cst_28 = arith.constant dense<0.000000e+00> : vector<16x8xf32>
    %116 = tpu.matmul %115, %102, %cst_28 {dimension_numbers = #tpu.dot_dimension_numbers<[1], [0], [0], [1], [0, 0, 1, 1], [], []>} : vector<16x16xbf16>, vector<16x8xbf16>, vector<16x8xf32> -> vector<16x8xf32>
    %117 = arith.truncf %116 : vector<16x8xf32> to vector<16x8xbf16>
    %c0_29 = arith.constant 0 : index
    %c32 = arith.constant 32 : index
    %118 = vector.load %arg6[%c0_29, %c32] : memref<16x64xbf16, #tpu.memory_space<vmem>>, vector<16x8xbf16>
    tpu.vector_store %arg6[%c0_29, %c32], %117 {strides = array<i32>} : memref<16x64xbf16, #tpu.memory_space<vmem>>, vector<16x8xbf16>,
    %119 = vector.extract_strided_slice %6 {offsets = [0, 40], sizes = [16, 8], strides = [1, 1]} : vector<16x64xf32> to vector<16x8xf32>
    %120 = arith.truncf %119 : vector<16x8xf32> to vector<16x8xbf16>
    %121 = vector.extract_strided_slice %7 {offsets = [0, 40], sizes = [16, 8], strides = [1, 1]} : vector<16x64xf32> to vector<16x8xf32>
    %122 = arith.truncf %121 : vector<16x8xf32> to vector<16x8xbf16>
    %123 = vector.extract_strided_slice %8 {offsets = [0, 40], sizes = [16, 8], strides = [1, 1]} : vector<16x64xf32> to vector<16x8xf32>
    %124 = arith.truncf %123 : vector<16x8xf32> to vector<16x8xbf16>
    %125 = tpu.transpose %122, [1, 0] : vector<16x8xbf16> -> vector<8x16xbf16>
    %cst_30 = arith.constant dense<0.000000e+00> : vector<16x16xf32>
    %126 = tpu.matmul %120, %125, %cst_30 {dimension_numbers = #tpu.dot_dimension_numbers<[1], [0], [0], [1], [0, 0, 1, 1], [], []>} : vector<16x8xbf16>, vector<8x16xbf16>, vector<16x16xf32> -> vector<16x16xf32>
    %cst_31 = arith.constant dense<0xFF800000> : vector<16xf32>
    %127 = vector.multi_reduction <maximumf>, %126, %cst_31 [1] : vector<16x16xf32> to vector<16xf32>
    %128 = vector.shape_cast %127 : vector<16xf32> to vector<16x1xf32>
    %129 = vector.broadcast %128 : vector<16x1xf32> to vector<16x16xf32>
    %130 = arith.subf %126, %129 : vector<16x16xf32>
    %131 = math.exp %130 : vector<16x16xf32>
    %cst_32 = arith.constant dense<0.000000e+00> : vector<16xf32>
    %132 = vector.multi_reduction <add>, %131, %cst_32 [1] : vector<16x16xf32> to vector<16xf32>
    %133 = vector.shape_cast %132 : vector<16xf32> to vector<16x1xf32>
    %134 = tpu.reciprocal %133 {approx = true} : vector<16x1xf32> -> vector<16x1xf32>
    %135 = vector.broadcast %134 : vector<16x1xf32> to vector<16x16xf32>
    %136 = arith.mulf %131, %135 : vector<16x16xf32>
    %137 = arith.truncf %136 : vector<16x16xf32> to vector<16x16xbf16>
    %cst_33 = arith.constant dense<0.000000e+00> : vector<16x8xf32>
    %138 = tpu.matmul %137, %124, %cst_33 {dimension_numbers = #tpu.dot_dimension_numbers<[1], [0], [0], [1], [0, 0, 1, 1], [], []>} : vector<16x16xbf16>, vector<16x8xbf16>, vector<16x8xf32> -> vector<16x8xf32>
    %139 = arith.truncf %138 : vector<16x8xf32> to vector<16x8xbf16>
    %c0_34 = arith.constant 0 : index
    %c40 = arith.constant 40 : index
    %140 = vector.load %arg6[%c0_34, %c40] : memref<16x64xbf16, #tpu.memory_space<vmem>>, vector<16x8xbf16>
    tpu.vector_store %arg6[%c0_34, %c40], %139 {strides = array<i32>} : memref<16x64xbf16, #tpu.memory_space<vmem>>, vector<16x8xbf16>,
    %141 = vector.extract_strided_slice %6 {offsets = [0, 48], sizes = [16, 8], strides = [1, 1]} : vector<16x64xf32> to vector<16x8xf32>
    %142 = arith.truncf %141 : vector<16x8xf32> to vector<16x8xbf16>
    %143 = vector.extract_strided_slice %7 {offsets = [0, 48], sizes = [16, 8], strides = [1, 1]} : vector<16x64xf32> to vector<16x8xf32>
    %144 = arith.truncf %143 : vector<16x8xf32> to vector<16x8xbf16>
    %145 = vector.extract_strided_slice %8 {offsets = [0, 48], sizes = [16, 8], strides = [1, 1]} : vector<16x64xf32> to vector<16x8xf32>
    %146 = arith.truncf %145 : vector<16x8xf32> to vector<16x8xbf16>
    %147 = tpu.transpose %144, [1, 0] : vector<16x8xbf16> -> vector<8x16xbf16>
    %cst_35 = arith.constant dense<0.000000e+00> : vector<16x16xf32>
    %148 = tpu.matmul %142, %147, %cst_35 {dimension_numbers = #tpu.dot_dimension_numbers<[1], [0], [0], [1], [0, 0, 1, 1], [], []>} : vector<16x8xbf16>, vector<8x16xbf16>, vector<16x16xf32> -> vector<16x16xf32>
    %cst_36 = arith.constant dense<0xFF800000> : vector<16xf32>
    %149 = vector.multi_reduction <maximumf>, %148, %cst_36 [1] : vector<16x16xf32> to vector<16xf32>
    %150 = vector.shape_cast %149 : vector<16xf32> to vector<16x1xf32>
    %151 = vector.broadcast %150 : vector<16x1xf32> to vector<16x16xf32>
    %152 = arith.subf %148, %151 : vector<16x16xf32>
    %153 = math.exp %152 : vector<16x16xf32>
    %cst_37 = arith.constant dense<0.000000e+00> : vector<16xf32>
    %154 = vector.multi_reduction <add>, %153, %cst_37 [1] : vector<16x16xf32> to vector<16xf32>
    %155 = vector.shape_cast %154 : vector<16xf32> to vector<16x1xf32>
    %156 = tpu.reciprocal %155 {approx = true} : vector<16x1xf32> -> vector<16x1xf32>
    %157 = vector.broadcast %156 : vector<16x1xf32> to vector<16x16xf32>
    %158 = arith.mulf %153, %157 : vector<16x16xf32>
    %159 = arith.truncf %158 : vector<16x16xf32> to vector<16x16xbf16>
    %cst_38 = arith.constant dense<0.000000e+00> : vector<16x8xf32>
    %160 = tpu.matmul %159, %146, %cst_38 {dimension_numbers = #tpu.dot_dimension_numbers<[1], [0], [0], [1], [0, 0, 1, 1], [], []>} : vector<16x16xbf16>, vector<16x8xbf16>, vector<16x8xf32> -> vector<16x8xf32>
    %161 = arith.truncf %160 : vector<16x8xf32> to vector<16x8xbf16>
    %c0_39 = arith.constant 0 : index
    %c48 = arith.constant 48 : index
    %162 = vector.load %arg6[%c0_39, %c48] : memref<16x64xbf16, #tpu.memory_space<vmem>>, vector<16x8xbf16>
    tpu.vector_store %arg6[%c0_39, %c48], %161 {strides = array<i32>} : memref<16x64xbf16, #tpu.memory_space<vmem>>, vector<16x8xbf16>,
    %163 = vector.extract_strided_slice %6 {offsets = [0, 56], sizes = [16, 8], strides = [1, 1]} : vector<16x64xf32> to vector<16x8xf32>
    %164 = arith.truncf %163 : vector<16x8xf32> to vector<16x8xbf16>
    %165 = vector.extract_strided_slice %7 {offsets = [0, 56], sizes = [16, 8], strides = [1, 1]} : vector<16x64xf32> to vector<16x8xf32>
    %166 = arith.truncf %165 : vector<16x8xf32> to vector<16x8xbf16>
    %167 = vector.extract_strided_slice %8 {offsets = [0, 56], sizes = [16, 8], strides = [1, 1]} : vector<16x64xf32> to vector<16x8xf32>
    %168 = arith.truncf %167 : vector<16x8xf32> to vector<16x8xbf16>
    %169 = tpu.transpose %166, [1, 0] : vector<16x8xbf16> -> vector<8x16xbf16>
    %cst_40 = arith.constant dense<0.000000e+00> : vector<16x16xf32>
    %170 = tpu.matmul %164, %169, %cst_40 {dimension_numbers = #tpu.dot_dimension_numbers<[1], [0], [0], [1], [0, 0, 1, 1], [], []>} : vector<16x8xbf16>, vector<8x16xbf16>, vector<16x16xf32> -> vector<16x16xf32>
    %cst_41 = arith.constant dense<0xFF800000> : vector<16xf32>
    %171 = vector.multi_reduction <maximumf>, %170, %cst_41 [1] : vector<16x16xf32> to vector<16xf32>
    %172 = vector.shape_cast %171 : vector<16xf32> to vector<16x1xf32>
    %173 = vector.broadcast %172 : vector<16x1xf32> to vector<16x16xf32>
    %174 = arith.subf %170, %173 : vector<16x16xf32>
    %175 = math.exp %174 : vector<16x16xf32>
    %cst_42 = arith.constant dense<0.000000e+00> : vector<16xf32>
    %176 = vector.multi_reduction <add>, %175, %cst_42 [1] : vector<16x16xf32> to vector<16xf32>
    %177 = vector.shape_cast %176 : vector<16xf32> to vector<16x1xf32>
    %178 = tpu.reciprocal %177 {approx = true} : vector<16x1xf32> -> vector<16x1xf32>
    %179 = vector.broadcast %178 : vector<16x1xf32> to vector<16x16xf32>
    %180 = arith.mulf %175, %179 : vector<16x16xf32>
    %181 = arith.truncf %180 : vector<16x16xf32> to vector<16x16xbf16>
    %cst_43 = arith.constant dense<0.000000e+00> : vector<16x8xf32>
    %182 = tpu.matmul %181, %168, %cst_43 {dimension_numbers = #tpu.dot_dimension_numbers<[1], [0], [0], [1], [0, 0, 1, 1], [], []>} : vector<16x16xbf16>, vector<16x8xbf16>, vector<16x8xf32> -> vector<16x8xf32>
    %183 = arith.truncf %182 : vector<16x8xf32> to vector<16x8xbf16>
    %c0_44 = arith.constant 0 : index
    %c56 = arith.constant 56 : index
    %184 = vector.load %arg6[%c0_44, %c56] : memref<16x64xbf16, #tpu.memory_space<vmem>>, vector<16x8xbf16>
    tpu.vector_store %arg6[%c0_44, %c56], %183 {strides = array<i32>} : memref<16x64xbf16, #tpu.memory_space<vmem>>, vector<16x8xbf16>,
    %c0_45 = arith.constant 0 : index
    %c0_46 = arith.constant 0 : index
    %185 = vector.load %arg6[%c0_45, %c0_46] : memref<16x64xbf16, #tpu.memory_space<vmem>>, vector<16x64xbf16>
    %c0_47 = arith.constant 0 : index
    %c0_48 = arith.constant 0 : index
    %186 = vector.load %arg3[%c0_47, %c0_48] : memref<64x128xbf16, #tpu.memory_space<vmem>>, vector<64x128xbf16>
    %cst_49 = arith.constant dense<0.000000e+00> : vector<16x128xf32>
    %187 = tpu.matmul %185, %186, %cst_49 {dimension_numbers = #tpu.dot_dimension_numbers<[1], [0], [0], [1], [0, 0, 1, 1], [], []>} : vector<16x64xbf16>, vector<64x128xbf16>, vector<16x128xf32> -> vector<16x128xf32>
    %c0_50 = arith.constant 0 : index
    %c0_51 = arith.constant 0 : index
    %188 = vector.load %arg4[%c0_50, %c0_51] : memref<1x128xf32, #tpu.memory_space<vmem>>, vector<1x128xf32>
    %189 = vector.broadcast %188 : vector<1x128xf32> to vector<16x128xf32>
    %190 = arith.addf %187, %189 : vector<16x128xf32>
    %c0_52 = arith.constant 0 : index
    %c0_53 = arith.constant 0 : index
    %191 = vector.load %arg5[%c0_52, %c0_53] : memref<16x128xf32, #tpu.memory_space<vmem>>, vector<16x128xf32>
    tpu.vector_store %arg5[%c0_52, %c0_53], %190 {strides = array<i32>} : memref<16x128xf32, #tpu.memory_space<vmem>>, vector<16x128xf32>,
    return
  }
  func.func @transform_0(%arg0: i32) -> (i32, i32) {
    %c0_i32 = arith.constant 0 : i32
    %c0_i32_0 = arith.constant 0 : i32
    return %arg0, %c0_i32 : i32, i32
  }
  func.func @transform_1(%arg0: i32) -> (i32, i32) {
    %c0_i32 = arith.constant 0 : i32
    %c0_i32_0 = arith.constant 0 : i32
    %c0_i32_1 = arith.constant 0 : i32
    return %c0_i32, %c0_i32_0 : i32, i32
  }
  func.func @transform_2(%arg0: i32) -> (i32, i32) {
    %c0_i32 = arith.constant 0 : i32
    %c0_i32_0 = arith.constant 0 : i32
    %c0_i32_1 = arith.constant 0 : i32
    return %c0_i32, %c0_i32_0 : i32, i32
  }
  func.func @transform_3(%arg0: i32) -> (i32, i32) {
    %c0_i32 = arith.constant 0 : i32
    %c0_i32_0 = arith.constant 0 : i32
    %c0_i32_1 = arith.constant 0 : i32
    return %c0_i32, %c0_i32_0 : i32, i32
  }
  func.func @transform_4(%arg0: i32) -> (i32, i32) {
    %c0_i32 = arith.constant 0 : i32
    %c0_i32_0 = arith.constant 0 : i32
    return %arg0, %c0_i32 : i32, i32
  }
}

</mosaic_0001>

<bundles_post_ra>
// kernel: tpu_custom_call.1
= control target key start
LH: loop header
LB: loop body
LE: loop exit
PB: predicated region body
PF: predicated region fallthrough
CT: control target
= control target key end

     0   :  { %9 = vsyncpa [#allocation4], 0  ;;  %s1956_s0 = inlined_call_operand.hbm [shape: f32[32,64], index: 0, kind: input, shape index: {}]   ;;  %s1957_s1 = inlined_call_operand.hbm [shape: bf16[64,192], index: 1, kind: input, shape index: {}]   ;;  %s1958_s2 = inlined_call_operand.hbm [shape: bf16[64,128], index: 2, kind: input, shape index: {}]   ;;  %s1959_s3 = inlined_call_operand.vmem [shape: f32[1,128], index: 3, kind: input, shape index: {}]   ;;  %s1960_s4 = inlined_call_operand.hbm [shape: f32[32,128], index: 4, kind: output, shape index: {}]  }
   0x1   :  { %11 = vsyncpa [#allocation4 + $0x1], 0 }
   0x2   :  { %12 = vsyncpa [#allocation7], 0 }
   0x3   :  { %13 = vsyncpa [#allocation5], 0 }
   0x4   :  { %15 = vsyncpa [#allocation5 + $0x1], 0  ;;  %s1609_s15 = smov 0   ;;  %s1611_s16 = smov 0  }
   0x5   :  { %s1613_s17 = smov 0   ;;  %s1615_s18 = smov 0  }
   0x6 LB: > { %s1630_s19 = sadd.s32 4294967295, %s1560_s18   ;;  %s1144_s20 = sadd.s32 4294967294, %s1560_s18   ;;  %s1560_s18 = sphi %s1615_s18, %s1970_s18   ;;  %s1556_s17 = sphi %s1613_s17, %s1969_s17   ;;  %s1552_s16 = sphi %s1611_s16, %s1968_s16   ;;  %s1548_s15 = sphi %s1609_s15, %s1967_s15  }
   0x7   : > { %p41_p0 = scmp.ne.s32.totalorder %s1552_s16, %s1548_s15  ;;  %p42_p1 = scmp.eq.s32.totalorder %s1630_s19, 0 }
   0x8   : > { %p128_p2 = scmp.eq.s32.totalorder %s1630_s19, 1  ;;  %p134_p3 = scmp.eq.s32.totalorder %s1144_s20, 1 }
   0x9   : > { %p1639_p4 = por %p42_p1, %p41_p0  ;;  %p1145_p5 = scmp.ge.s32.totalorder %s1560_s18, 1 }
   0xa   : > { %p1644_p6 = por %p134_p3, %p41_p0  ;;  %p141_p7 = scmp.lt.s32.totalorder %s1560_s18, 3 }
   0xb   : > { %s152_s25 = sshll.u32 %s1957_s1, 4  ;;  %s1562_s27 = smov [#allocation6]   ;;  %s153_s25 = int_to_ptr.hbm [resolvable:$true] %s152_s25 }
   0xc   : > { %p1652_p8 = pnand %p1145_p5, %p141_p7  ;;  %s154_s28 = sshll.u32 %s1562_s27, 4  ;;  %s155_s28 = int_to_ptr.vmem [resolvable:$true] %s154_s28 }
   0xd   : > { %s166_s5 = sshll.u32 %s1958_s2, 4  ;;  %s1563_s6 = smov 128   ;;  %s167_s5 = int_to_ptr.hbm [resolvable:$true] %s166_s5 }
   0xe   : > { %p1260_p9 = pneg %p1652_p8  ;;  %s1564_s7 = smov 8  }
   0xf   : > { %s1565_s8 = smov [#allocation8]   ;;  %s1566_s10 = smov 64  }
  0x10   : > { %p1261_p10 = pnand %p1260_p9, %p42_p1  ;;  %s168_s9 = sshll.u32 %s1565_s8, 4  ;;  %s169_s9 = int_to_ptr.vmem [resolvable:$true] %s168_s9 }
  0x11   : > { %s1567_s11 = smov 4   ;;  %s1668_s12 = sadd.s32 1, %s1560_s18  }
  0x12   : > { %1263 = dma.hbm_to_vmem [thread:$0]  (!%p1261_p10), %s153_s25, 1024, %s155_s28, [#allocation7], %s1563_s6, %s1563_s6, %s1564_s7  }
  0x13   : > { %1266 = dma.hbm_to_vmem [thread:$0]  (!%p1261_p10), %s167_s5, 512, %s169_s9, [#allocation7], %s1566_s10, %s1566_s10, %s1567_s11  }
  0x14   : > { %s25_s13 = ssub.s32 %s1560_s18, %s1668_s12  ;;  %s28_s14 = sadd.s32 1, %s1556_s17 }
  0x15   : > { %p26_p12 = scmp.eq.s32.totalorder %s25_s13, 0  ;;  %p35_p13 = scmp.ne.s32.totalorder %s1556_s17, %s1552_s16 }
  0x16   : > { %p36_p0 = scmp.eq.s32.totalorder %s1560_s18, 0  ;;  %p1277_p7 = scmp.lt.s32.totalorder %s1560_s18, 2 }
  0x17   : > { %s1677_s20 = scalar_select %p26_p12, %s1556_s17, %s28_s14  }
  0x18   : > { %p37_p3 = por %p36_p0, %p35_p13  ;;  %p1681_p5 = por %p128_p2, %p35_p13 }
  0x19   : > { %s185_s24 = sand.u32 1, %s1556_s17   ;;  %s1233_s27 = sshll.u32 %s1560_s18, 4 }
  0x1a   : > { %s1149_s25 = sshll.u32 %s185_s24, 4  ;;  %s194_s30 = scalar_lea.hbm %s1956_s0, %s1233_s27 }
  0x1b   : > { %s189_s5 = scalar_lea.vmem [#allocation3], %s1149_s25  ;;  %s195_s9 = sshll.u32 %s194_s30, 4  ;;  %s196_s9 = int_to_ptr.hbm [resolvable:$true] %s195_s9 }
  0x1c   : > { %s197_s8 = sshll.u32 %s189_s5, 4  ;;  %p1691_p9 = pnand %p1277_p7, %p37_p3  ;;  %s198_s8 = int_to_ptr.vmem [resolvable:$true] %s197_s8 }
  0x1d   : > { %s186_s11 = scalar_lea.sflag [#allocation4], %s185_s24  ;;  %s1460_s13 = sshra.s32 %s196_s9, 4  ;;  %s1461_s13 = int_to_ptr.hbm [resolvable:$true] %s1460_s13 }
  0x1e   : > { %s1462_s14 = scalar_lea.hbm %s1461_s13, 16  ;;  %p1464_p10 = pneg %p1691_p9 }
  0x1f   : > { %p1463_p2 = scmp.ne.s32.totalorder %s1461_s13, %s1462_s14  ;;  %s1467_s28 = scalar_lea.hbm %s1956_s0, 32 }
  0x20   : > { %p1468_p0 = scmp.lt.s32.totalorder %s1461_s13, %s1956_s0  ;;  %p1469_p3 = scmp.lt.s32.totalorder %s1467_s28, %s1462_s14 }
  0x21   : > { %p1465_p12 = pnand %p1464_p10, %p1463_p2 }
  0x22   : > { %p1470_p7 = por %p1469_p3, %p1468_p0 }
  0x23   : > { %p1466_p13 = pneg %p1465_p12 }
  0x25   : > { %p1471_p11 = pnand %p1470_p7, %p1466_p13 }
  0x27   : > { %1474 = shalt.err (!%p1471_p11)
}
  0x28   : > { %1270 = dma.hbm_to_vmem [thread:$0]  (!%p1691_p9), %s196_s9, 256, %s198_s8, %s186_s11, %s1563_s6, %s1563_s6, %s1564_s7  }
  0x29   : > { %209 = sbr.rel (%p1652_p8) target bundleno = 1811 (0x713), region = 36  ;;  %s1711_s24 = sand.u32 (!%p1652_p8), 1, %s1552_s16  }
  0x2a   : > { %s1153_s5 = sshll.u32 (!%p1652_p8), %s1711_s24, 4  ;;  %s212_s13 = scalar_lea.sflag (!%p1652_p8), [#allocation4], %s1711_s24 }
  0x2b   : > { %s1717_s14 = scalar_lea.vmem (!%p1652_p8), [#allocation3], %s1153_s5 }
  0x2e   : > { %1535 = dma.done.wait (%p1639_p4), %s212_s13, 256  }
  0x2f   : > { %1537 = vsyncadd (%p1639_p4), %s212_s13, 4294967040 }
  0x30   : > { %1539 = dma.done.wait (%p42_p1), [#allocation7], 1536  }
  0x31   : > { %1541 = vsyncadd (%p42_p1), [#allocation7], 4294965760  ;;  %v1183_v0 = vld [vmem:[#allocation6 + $0x30] sm:$0xf]  ;;  %v1241_v1 = vld [vmem:[#allocation6 + $0x34] sm:$0xf0] }
  0x32   : > { %v1175_v2 = vld [vmem:[#allocation6 + $0x20] sm:$0xf]  ;;  %v1184_v3 = vor.u32 %v1241_v1, %v1183_v0  ;;  %v1239_v4 = vld [vmem:[#allocation6 + $0x24] sm:$0xf0]  ;;  %v1167_v6 = vld [vmem:[#allocation6 + $0x10] sm:$0xf] }
  0x33   : > { %v1176_v5 = vor.u32 %v1239_v4, %v1175_v2  ;;  %v1240_v7 = vld [vmem:[#allocation6 + $0x34] sm:$0xf]  ;;  %v1185_v8 = vld [vmem:[#allocation6 + $0x38] sm:$0xf0]  ;;  %v1237_v9 = vld [vmem:[#allocation6 + $0x14] sm:$0xf0] }
  0x34   : > { %313 = vmatpush.bf16.msra.mxu0 %v1184_v3  ;;  %v1188_v10 = vor.u32 %v1240_v7, %v1185_v8  ;;  %v1238_v11 = vld [vmem:[#allocation6 + $0x24] sm:$0xf]  ;;  %v1177_v12 = vld [vmem:[#allocation6 + $0x28] sm:$0xf0]  ;;  %v1168_v14 = vor.u32 %v1237_v9, %v1167_v6  ;;  %v1236_v15 = vld [vmem:[#allocation6 + $0x14] sm:$0xf] }
  0x35   : > { %v1180_v13 = vor.u32 %v1238_v11, %v1177_v12  ;;  %v1169_v16 = vld [vmem:[#allocation6 + $0x18] sm:$0xf0]  ;;  %v1159_v17 = vld [vmem:[#allocation6] sm:$0xf]  ;;  %v1235_v18 = vld [vmem:[#allocation6 + $0x4] sm:$0xf0] }
  0x36   : > { %327 = vmatpush.bf16.msra.mxu1 %v1188_v10  ;;  %v254_v19 = vld [vmem:[%s1717_s14] sm:$0xff]  ;;  %v1172_v20 = vor.u32 %v1236_v15, %v1169_v16  ;;  %v1160_v21 = vor.u32 %v1235_v18, %v1159_v17  ;;  %v255_v22 = vld [vmem:[%s1717_s14 + $0x8] sm:$0xff]  ;;  %vm305_vm0 = vcmask 523264   ;;  %s1568_s21 = smov 56   ;;  %s1569_s26 = smov 64   ;;  %vm345_vm1 = vcmask 64512  }
  0x37   : > { %v1234_v23 = vld [vmem:[#allocation6 + $0x4] sm:$0xf]  ;;  %v1161_v24 = vld [vmem:[#allocation6 + $0x8] sm:$0xf0]  ;;  %v256_v25 = vpack.c.bf16 %v255_v22, %v254_v19  ;;  %vm366_vm2 = vcmask 130048   ;;  %s1570_s6 = smov 88  }
  0x38   : > { %314 = vmatpush.bf16.msra.mxu0 %v1176_v5  ;;  %v1164_v26 = vor.u32 %v1234_v23, %v1161_v24  ;;  %s1571_s7 = smov 16   ;;  %s1572_s8 = smov 120   ;;  %vm409_vm3 = vcmask 60416   ;;  %vm491_vm4 = vcmask 126016   ;;  %vm571_vm5 = vcmask 191616  }
  0x39   : > { %s1573_s9 = smov 40   ;;  %s1574_s10 = smov 48   ;;  %vm651_vm6 = vcmask 257216   ;;  %vm731_vm7 = vcmask 322816   ;;  %vm811_vm8 = vcmask 388416   ;;  %vm891_vm9 = vcmask 454016  }
  0x3a   : > { %328 = vmatpush.bf16.msra.mxu1 %v1180_v13  ;;  %s1575_s11 = smov 104   ;;  %s1576_s27 = smov 112   ;;  %vm971_vm10 = vcmask 519616  }
  0x3b   : > { %s1577_s25 = smov 24   ;;  %s1578_s28 = smov 8  }
  0x3c   : > { %315 = vmatpush.bf16.msra.mxu0 %v1168_v14  ;;  %s1579_s29 = smov 32   ;;  %s1580_s30 = smov 72  }
  0x3d   : > { %s1581_s13 = smov 96   ;;  %s1582_s14 = smov 80  }
  0x3e   : > { %329 = vmatpush.bf16.msra.mxu1 %v1172_v20 }
  0x40   : > { %316 = vmatpush.bf16.msra.mxu0 %v1160_v21 }
  0x42   : > { %330 = vmatpush.bf16.msra.mxu1 %v1164_v26 }
  0x43   : > { %1189 = vmatmul.msk.bf16.vlgmr.msra.gmra.mxu0 %vm305_vm0, %v256_v25 }
  0x45   : > { %1190 = vmatmul.msk.bf16.vlgmr.msra.gmra.mxu1 %vm305_vm0, %v256_v25 }
  0xc0   : > { %v318_v27 = vpop.f32.mrf.mxu0 }
  0xc1   : > { %v337_v38 = vmul.f32 0.35355338, %v318_v27 }
  0xc2   : > { %v332_v28 = vpop.f32.mrf.mxu1 }
  0xc8   : > { %v320_v29 = vpop.f32.mrf.mxu0 }
  0xc9   : > { %v340_v30 = vpack.c.bf16 %v320_v29, %v318_v27  ;;  %v338_v37 = vmul.f32 0.35355338, %v320_v29 }
  0xca   : > { %v334_v31 = vpop.f32.mrf.mxu1 }
  0xcb   : > { %415 = vrot.lane.b32.xlu2 %v340_v30, %s1568_s21  ;;  %343 = vrot.lane.b32.xlu0 %v340_v30, %s1569_s26  ;;  %v1732_v32 = vpack.c.bf16 %v334_v31, %v332_v28  ;;  %v339_v39 = vpack.c.bf16 %v338_v37, %v337_v38 }
  0xcd   : > { %400 = vmatpush.bf16.msra.mxu3 %v1732_v32 }
 0x125   : > { %v416_v33 = vpop.permute.xlu2 %415 }
 0x126   : > { %v421_v34 = vsel %vm345_vm1, %v416_v33, 0 }
 0x127   : > { %430 = vmatpush.bf16.xpose.msrb.mxu3 %v421_v34 }
 0x13d   : > { %v344_v35 = vpop.permute.xlu0 %343 }
 0x13e   : > { %v350_v36 = vsel %vm345_vm1, %v344_v35, 0 }
 0x13f   : > { %359 = vmatpush.bf16.xpose.msra.mxu2 %v350_v36 }
 0x146   : > { %1191 = vmatmul.msk.bf16.vlgmr.msra.gmra.mxu2 %vm345_vm1, %v339_v39 }
 0x1c9   : > { %v361_v40 = vpop.f32.mrf.mxu2 }
 0x1ca   : > { %v367_v41 = vsel %vm366_vm2, %v361_v40, -inf }
 0x1cb   : > { %368 = vmax.xlane.f32.xlu0 %v367_v41 }
 0x1d1   : > { %v363_v42 = vpop.f32.mrf.mxu2 }
 0x1d2   : > { %v370_v43 = vsel %vm366_vm2, %v363_v42, -inf }
 0x1d3   : > { %371 = vmax.xlane.f32.xlu1 %v370_v43 }
 0x1df   : > { %734 = vrot.lane.b32.xlu0 %v339_v39, %s1570_s6 }
 0x1e7   : > { %816 = vrot.lane.b32.xlu0 %v340_v30, %s1571_s7 }
 0x23e   : > { %v369_v44 = vpop.xlane.xlu0 %368 }
 0x23f   : > { %v373_v45 = vsub.f32 %v361_v40, %v369_v44 }
 0x241   : > { %v375_v46 = vmul.f32 1.442695, %v373_v45 }
 0x243   : > { %1336 = vpow2.f32 %v375_v46 }
 0x246   : > { %v372_v47 = vpop.xlane.xlu1 %371 }
 0x247   : > { %v374_v48 = vsub.f32 %v363_v42, %v372_v47 }
 0x249   : > { %v1337_v49 = vpop.eup %1336  ;;  %v377_v50 = vmul.f32 1.442695, %v374_v48 }
 0x24a   : > { %v379_v51 = vsel %vm366_vm2, %v1337_v49, 0.0 }
 0x24b   : > { %1338 = vpow2.f32 %v377_v50  ;;  %380 = vadd.xlane.f32.xlu1 %v379_v51 }
 0x251   : > { %v1339_v52 = vpop.eup %1338  ;;  %v735_v1 = vpop.permute.xlu0 %734 }
 0x252   : > { %v382_v53 = vsel %vm366_vm2, %v1339_v52, 0.0 }
 0x253   : > { %383 = vadd.xlane.f32.xlu2 %v382_v53 }
 0x259   : > { %v817_v6 = vpop.permute.xlu0 %816 }
 0x25a   : > { %v822_v10 = vsel %vm345_vm1, %v817_v6, 0 }
 0x264   : > { %413 = vrot.lane.b32.xlu1 %v339_v39, %s1572_s8 }
 0x26b   : > { %576 = vrot.lane.b32.xlu2 %v340_v30, %s1573_s9 }
 0x26c   : > { %496 = vrot.lane.b32.xlu1 %v340_v30, %s1574_s10 }
 0x273   : > { %574 = vrot.lane.b32.xlu2 %v339_v39, %s1575_s11 }
 0x274   : > { %494 = vrot.lane.b32.xlu1 %v339_v39, %s1576_s27 }
 0x27b   : > { %736 = vrot.lane.b32.xlu2 %v340_v30, %s1577_s25 }
 0x27c   : > { %896 = vrot.lane.b32.xlu1 %v340_v30, %s1578_s28 }
 0x283   : > { %656 = vrot.lane.b32.xlu2 %v340_v30, %s1579_s29 }
 0x284   : > { %894 = vrot.lane.b32.xlu1 %v339_v39, %s1580_s30 }
 0x28b   : > { %654 = vrot.lane.b32.xlu2 %v339_v39, %s1581_s13 }
 0x293   : > { %814 = vrot.lane.b32.xlu2 %v339_v39, %s1582_s14 }
 0x2be   : > { %v381_v54 = vpop.xlane.xlu1 %380 }
 0x2bf   : > { %1340 = vrcp.f32 %v381_v54 }
 0x2c5   : > { %v1341_v56 = vpop.eup %1340 }
 0x2c6   : > { %v384_v55 = vpop.xlane.xlu2 %383  ;;  %v387_v59 = vmul.f32 %v1341_v56, %v1337_v49 }
 0x2c7   : > { %1342 = vrcp.f32 %v384_v55 }
 0x2cd   : > { %v1343_v57 = vpop.eup %1342 }
 0x2ce   : > { %v577_v58 = vpop.permute.xlu2 %576  ;;  %v388_v60 = vmul.f32 %v1343_v57, %v1339_v52 }
 0x2cf   : > { %v582_v62 = vsel %vm345_vm1, %v577_v58, 0 }
 0x2d0   : > { %v389_v61 = vpack.c.bf16 %v388_v60, %v387_v59 }
 0x2d2   : > { %1192 = vmatmul.msk.bf16.vlgmr.msra.gmra.mxu3 %vm366_vm2, %v389_v61 }
 0x2d3   : > { %591 = vmatpush.bf16.xpose.msra.mxu3 %v582_v62 }
 0x2d6   : > { %v575_v63 = vpop.permute.xlu2 %574  ;;  %v414_v0 = vpop.permute.xlu1 %413 }
 0x2de   : > { %v737_v2 = vpop.permute.xlu2 %736  ;;  %v497_v3 = vpop.permute.xlu1 %496 }
 0x2df   : > { %v502_v4 = vsel %vm345_vm1, %v497_v3, 0  ;;  %v742_v5 = vsel %vm345_vm1, %v737_v2, 0 }
 0x2e0   : > { %511 = vmatpush.bf16.xpose.msrb.mxu0 %v502_v4 }
 0x2e2   : > { %1193 = vmatmul.msk.bf16.vlgmr.msrb.gmra.mxu3 %vm345_vm1, %v414_v0 }
 0x2e3   : > { %751 = vmatpush.bf16.xpose.msrb.mxu3 %v742_v5 }
 0x2e6   : > { %v657_v7 = vpop.permute.xlu2 %656  ;;  %v495_v8 = vpop.permute.xlu1 %494 }
 0x2e7   : > { %v662_v9 = vsel %vm345_vm1, %v657_v7, 0  ;;  %1195 = vmatmul.msk.bf16.vlgmr.msrb.gmra.mxu0 %vm345_vm1, %v495_v8 }
 0x2e8   : > { %671 = vmatpush.bf16.xpose.msra.mxu0 %v662_v9 }
 0x2ee   : > { %v897_v11 = vpop.permute.xlu1 %896  ;;  %v655_v13 = vpop.permute.xlu2 %654 }
 0x2ef   : > { %v902_v12 = vsel %vm345_vm1, %v897_v11, 0 }
 0x2f0   : > { %831 = vmatpush.bf16.xpose.msrb.mxu0 %v822_v10 }
 0x2f2   : > { %1197 = vmatmul.msk.bf16.vlgmr.msra.gmra.mxu3 %vm345_vm1, %v575_v63 }
 0x2f3   : > { %911 = vmatpush.bf16.xpose.msra.mxu3 %v902_v12 }
 0x2f6   : > { %v815_v14 = vpop.permute.xlu2 %814  ;;  %v895_v15 = vpop.permute.xlu1 %894 }
 0x2f7   : > { %1199 = vmatmul.msk.bf16.vlgmr.msra.gmra.mxu0 %vm345_vm1, %v655_v13 }
 0x302   : > { %1201 = vmatmul.msk.bf16.vlgmr.msrb.gmra.mxu3 %vm345_vm1, %v735_v1 }
 0x307   : > { %1203 = vmatmul.msk.bf16.vlgmr.msrb.gmra.mxu0 %vm345_vm1, %v815_v14 }
 0x312   : > { %1205 = vmatmul.msk.bf16.vlgmr.msra.gmra.mxu3 %vm345_vm1, %v895_v15 }
 0x355   : > { %v402_v16 = vpop.f32.mrf.mxu3 }
 0x356   : > { %v407_v17 = vpack.c.bf16 %v402_v16, %v402_v16 }
 0x358   : > { %410 = vst.msk [vmem:[#allocation2] sm:$0xf] %vm409_vm3, %v407_v17 }
 0x35d   : > { %v404_v18 = vpop.f32.mrf.mxu3 }
 0x35e   : > { %v408_v19 = vpack.c.bf16 %v404_v18, %v404_v18 }
 0x360   : > { %411 = vst.msk [vmem:[#allocation2 + $0x4] sm:$0xf] %vm409_vm3, %v408_v19 }
 0x364   : > { %v513_v20 = vpop.f32.mrf.mxu0 }
 0x365   : > { %v518_v21 = vsel %vm366_vm2, %v513_v20, -inf  ;;  %v1786_v33 = vpop.f32.mrf.mxu3 }
 0x366   : > { %519 = vmax.xlane.f32.xlu0 %v518_v21  ;;  %v437_v52 = vsel %vm366_vm2, %v1786_v33, -inf }
 0x36c   : > { %v515_v22 = vpop.f32.mrf.mxu0 }
 0x36d   : > { %v521_v23 = vsel %vm366_vm2, %v515_v22, -inf  ;;  %v434_v34 = vpop.f32.mrf.mxu3 }
 0x36e   : > { %522 = vmax.xlane.f32.xlu2 %v521_v23  ;;  %v440_v35 = vsel %vm366_vm2, %v434_v34, -inf }
 0x374   : > { %v1771_v24 = vpop.f32.mrf.mxu0 }
 0x375   : > { %v678_v25 = vsel %vm366_vm2, %v1771_v24, -inf  ;;  %v1789_v40 = vpop.f32.mrf.mxu3 }
 0x376   : > { %679 = vmax.xlane.f32.xlu2 %v678_v25  ;;  %v598_v1 = vsel %vm366_vm2, %v1789_v40, -inf }
 0x37a   : > { %461 = vrot.lane.b32.xlu0 %v1732_v32, %s1572_s8 }
 0x37c   : > { %v675_v26 = vpop.f32.mrf.mxu0 }
 0x37d   : > { %v681_v27 = vsel %vm366_vm2, %v675_v26, -inf  ;;  %v1797_v46 = vpop.f32.mrf.mxu3 }
 0x37e   : > { %682 = vmax.xlane.f32.xlu1 %v681_v27  ;;  %v601_v7 = vsel %vm366_vm2, %v1797_v46, -inf }
 0x384   : > { %v1778_v28 = vpop.f32.mrf.mxu0 }
 0x385   : > { %v838_v29 = vsel %vm366_vm2, %v1778_v28, -inf  ;;  %v1803_v53 = vpop.f32.mrf.mxu3 }
 0x386   : > { %839 = vmax.xlane.f32.xlu2 %v838_v29  ;;  %v758_v10 = vsel %vm366_vm2, %v1803_v53, -inf }
 0x38c   : > { %v1782_v30 = vpop.f32.mrf.mxu0 }
 0x38d   : > { %v841_v31 = vsel %vm366_vm2, %v1782_v30, -inf  ;;  %v1811_v56 = vpop.f32.mrf.mxu3 }
 0x38e   : > { %842 = vmax.xlane.f32.xlu1 %v841_v31  ;;  %v761_v57 = vsel %vm366_vm2, %v1811_v56, -inf }
 0x395   : > { %v1815_v58 = vpop.f32.mrf.mxu3 }
 0x396   : > { %v918_v59 = vsel %vm366_vm2, %v1815_v58, -inf }
 0x39d   : > { %v1827_v2 = vpop.f32.mrf.mxu3 }
 0x39e   : > { %v921_v4 = vsel %vm366_vm2, %v1827_v2, -inf }
 0x3a4   : > { %441 = vmax.xlane.f32.xlu0 %v440_v35 }
 0x3d9   : > { %v520_v36 = vpop.xlane.xlu0 %519 }
 0x3da   : > { %v524_v37 = vsub.f32 %v513_v20, %v520_v36 }
 0x3dc   : > { %v526_v38 = vmul.f32 1.442695, %v524_v37 }
 0x3de   : > { %1344 = vpow2.f32 %v526_v38 }
 0x3e1   : > { %v523_v39 = vpop.xlane.xlu2 %522 }
 0x3e2   : > { %v525_v41 = vsub.f32 %v515_v22, %v523_v39 }
 0x3e4   : > { %v1791_v42 = vpop.eup %1344  ;;  %v528_v43 = vmul.f32 1.442695, %v525_v41 }
 0x3e5   : > { %v530_v44 = vsel %vm366_vm2, %v1791_v42, 0.0 }
 0x3e6   : > { %1346 = vpow2.f32 %v528_v43  ;;  %531 = vadd.xlane.f32.xlu2 %v530_v44 }
 0x3e9   : > { %v680_v3 = vpop.xlane.xlu2 %679 }
 0x3ea   : > { %v684_v5 = vsub.f32 %v1771_v24, %v680_v3 }
 0x3ec   : > { %v1795_v45 = vpop.eup %1346  ;;  %v462_v47 = vpop.permute.xlu0 %461  ;;  %v686_v6 = vmul.f32 1.442695, %v684_v5 }
 0x3ed   : > { %474 = vmatpush.bf16.msrb.mxu2 %v462_v47  ;;  %v533_v48 = vsel %vm366_vm2, %v1795_v45, 0.0 }
 0x3ee   : > { %534 = vadd.xlane.f32.xlu1 %v533_v48 }
 0x3f1   : > { %v683_v49 = vpop.xlane.xlu1 %682 }
 0x3f2   : > { %v685_v50 = vsub.f32 %v675_v26, %v683_v49 }
 0x3f4   : > { %v688_v51 = vmul.f32 1.442695, %v685_v50 }
 0x3f6   : > { %1348 = vpow2.f32 %v688_v51  ;;  %438 = vmax.xlane.f32.xlu1 %v437_v52 }
 0x3f9   : > { %v840_v11 = vpop.xlane.xlu2 %839 }
 0x3fc   : > { %v1805_v54 = vpop.eup %1348 }
 0x3fd   : > { %v693_v55 = vsel %vm366_vm2, %v1805_v54, 0.0 }
 0x3fe   : > { %621 = vrot.lane.b32.xlu2 %v1732_v32, %s1575_s11  ;;  %694 = vadd.xlane.f32.xlu0 %v693_v55 }
 0x401   : > { %v843_v12 = vpop.xlane.xlu1 %842 }
 0x406   : > { %762 = vmax.xlane.f32.xlu0 %v761_v57 }
 0x40e   : > { %919 = vmax.xlane.f32.xlu0 %v918_v59 }
 0x40f   : > { %541 = vrot.lane.b32.xlu1 %v1732_v32, %s1576_s27 }
 0x417   : > { %v442_v60 = vpop.xlane.xlu0 %441 }
 0x418   : > { %v444_v61 = vsub.f32 %v434_v34, %v442_v60 }
 0x41a   : > { %v447_v62 = vmul.f32 1.442695, %v444_v61 }
 0x41c   : > { %1350 = vpow2.f32 %v447_v62 }
 0x41d   : > { %1352 = vpow2.f32 %v686_v6 }
 0x422   : > { %v1821_v63 = vpop.eup %1350 }
 0x423   : > { %v452_v0 = vsel %vm366_vm2, %v1821_v63, 0.0  ;;  %v1353_v8 = vpop.eup %1352 }
 0x424   : > { %453 = vadd.xlane.f32.xlu0 %v452_v0  ;;  %v690_v9 = vsel %vm366_vm2, %v1353_v8, 0.0 }
 0x427   : > { %599 = vmax.xlane.f32.xlu2 %v598_v1 }
 0x42f   : > { %922 = vmax.xlane.f32.xlu2 %v921_v4 }
 0x439   : > { %602 = vmax.xlane.f32.xlu1 %v601_v7 }
 0x441   : > { %691 = vadd.xlane.f32.xlu1 %v690_v9 }
 0x449   : > { %759 = vmax.xlane.f32.xlu1 %v758_v10 }
 0x459   : > { %v532_v13 = vpop.xlane.xlu2 %531 }
 0x461   : > { %v622_v14 = vpop.permute.xlu2 %621  ;;  %v535_v15 = vpop.xlane.xlu1 %534 }
 0x462   : > { %634 = vmatpush.bf16.msra.mxu2 %v622_v14 }
 0x469   : > { %v439_v16 = vpop.xlane.xlu1 %438 }
 0x46a   : > { %v443_v17 = vsub.f32 %v1786_v33, %v439_v16 }
 0x46c   : > { %v445_v18 = vmul.f32 1.442695, %v443_v17 }
 0x46e   : > { %1354 = vpow2.f32 %v445_v18 }
 0x46f   : > { %1356 = vrcp.f32 %v535_v15 }
 0x470   : > { %1358 = vrcp.f32 %v532_v13 }
 0x471   : > { %v695_v27 = vpop.xlane.xlu0 %694 }
 0x474   : > { %v1838_v19 = vpop.eup %1354 }
 0x475   : > { %v449_v20 = vsel %vm366_vm2, %v1838_v19, 0.0  ;;  %v1357_v21 = vpop.eup %1356 }
 0x476   : > { %450 = vadd.xlane.f32.xlu1 %v449_v20  ;;  %v1359_v22 = vpop.eup %1358  ;;  %v539_v23 = vmul.f32 %v1357_v21, %v1795_v45  ;;  %v844_v45 = vsub.f32 %v1778_v28, %v840_v11  ;;  %v845_v28 = vsub.f32 %v1782_v30, %v843_v12 }
 0x477   : > { %v538_v24 = vmul.f32 %v1359_v22, %v1791_v42 }
 0x479   : > { %v540_v26 = vpack.c.bf16 %v539_v23, %v538_v24  ;;  %v763_v34 = vpop.xlane.xlu0 %762 }
 0x47a   : > { %v765_v3 = vsub.f32 %v1811_v56, %v763_v34 }
 0x47c   : > { %v768_v4 = vmul.f32 1.442695, %v765_v3 }
 0x481   : > { %v542_v25 = vpop.permute.xlu1 %541  ;;  %v920_v37 = vpop.xlane.xlu0 %919 }
 0x482   : > { %554 = vmatpush.bf16.msrb.mxu1 %v542_v25  ;;  %v924_v41 = vsub.f32 %v1815_v58, %v920_v37 }
 0x484   : > { %v926_v43 = vmul.f32 1.442695, %v924_v41 }
 0x485   : > { %1196 = vmatmul.msk.bf16.vlgmr.msrb.gmra.mxu1 %vm366_vm2, %v540_v26 }
 0x497   : > { %v454_v6 = vpop.xlane.xlu0 %453 }
 0x49a   : > { %v600_v29 = vpop.xlane.xlu2 %599 }
 0x49b   : > { %v604_v31 = vsub.f32 %v1789_v40, %v600_v29 }
 0x49d   : > { %v606_v33 = vmul.f32 1.442695, %v604_v31 }
 0x49f   : > { %1360 = vpow2.f32 %v606_v33 }
 0x4a2   : > { %v923_v12 = vpop.xlane.xlu2 %922 }
 0x4a3   : > { %v925_v14 = vsub.f32 %v1827_v2, %v923_v12 }
 0x4a5   : > { %v1846_v35 = vpop.eup %1360  ;;  %v928_v15 = vmul.f32 1.442695, %v925_v14 }
 0x4a6   : > { %v610_v36 = vsel %vm366_vm2, %v1846_v35, 0.0 }
 0x4a7   : > { %611 = vadd.xlane.f32.xlu2 %v610_v36 }
 0x4ac   : > { %v603_v38 = vpop.xlane.xlu1 %602 }
 0x4ad   : > { %v605_v39 = vsub.f32 %v1797_v46, %v603_v38  ;;  %v846_v46 = vmul.f32 1.442695, %v844_v45 }
 0x4af   : > { %v608_v42 = vmul.f32 1.442695, %v605_v39 }
 0x4b1   : > { %1362 = vpow2.f32 %v608_v42 }
 0x4b2   : > { %1364 = vrcp.f32 %v695_v27 }
 0x4b4   : > { %v692_v40 = vpop.xlane.xlu1 %691 }
 0x4b5   : > { %1366 = vrcp.f32 %v692_v40 }
 0x4b6   : > { %1368 = vpow2.f32 %v926_v43 }
 0x4b7   : > { %v1852_v44 = vpop.eup %1362  ;;  %1370 = vpow2.f32 %v846_v46 }
 0x4b8   : > { %v613_v47 = vsel %vm366_vm2, %v1852_v44, 0.0  ;;  %v1365_v48 = vpop.eup %1364 }
 0x4b9   : > { %614 = vadd.xlane.f32.xlu1 %v613_v47  ;;  %v699_v50 = vmul.f32 %v1365_v48, %v1805_v54  ;;  %v848_v54 = vmul.f32 1.442695, %v845_v28 }
 0x4bb   : > { %v1367_v49 = vpop.eup %1366 }
 0x4bc   : > { %v698_v51 = vmul.f32 %v1367_v49, %v1353_v8  ;;  %v760_v52 = vpop.xlane.xlu1 %759  ;;  %v1858_v55 = vpop.eup %1368 }
 0x4bd   : > { %v764_v57 = vsub.f32 %v1803_v53, %v760_v52  ;;  %v930_v60 = vsel %vm366_vm2, %v1858_v55, 0.0  ;;  %v1866_v61 = vpop.eup %1370 }
 0x4be   : > { %v700_v58 = vpack.c.bf16 %v699_v50, %v698_v51  ;;  %v850_v53 = vsel %vm366_vm2, %v1866_v61, 0.0 }
 0x4bf   : > { %v766_v59 = vmul.f32 1.442695, %v764_v57  ;;  %701 = vrot.lane.b32.xlu2 %v1732_v32, %s1581_s13  ;;  %s1510_s13 = scalar_lea.hbm %s1960_s4, 32 }
 0x4c1   : > { %1372 = vpow2.f32 %v766_v59  ;;  %931 = vadd.xlane.f32.xlu1 %v930_v60 }
 0x4c2   : > { %1374 = vpow2.f32 %v848_v54 }
 0x4c3   : > { %1376 = vpow2.f32 %v768_v4 }
 0x4c4   : > { %1378 = vrcp.f32 %v454_v6 }
 0x4c7   : > { %v1868_v62 = vpop.eup %1372 }
 0x4c8   : > { %v770_v30 = vsel %vm366_vm2, %v1868_v62, 0.0  ;;  %v1375_v0 = vpop.eup %1374 }
 0x4c9   : > { %851 = vadd.xlane.f32.xlu1 %v850_v53  ;;  %771 = vadd.xlane.f32.xlu0 %v770_v30  ;;  %v853_v1 = vsel %vm366_vm2, %v1375_v0, 0.0  ;;  %v1878_v5 = vpop.eup %1376 }
 0x4ca   : > { %v773_v7 = vsel %vm366_vm2, %v1878_v5, 0.0  ;;  %v1379_v9 = vpop.eup %1378 }
 0x4cb   : > { %v458_v10 = vmul.f32 %v1379_v9, %v1821_v63 }
 0x4d1   : > { %854 = vadd.xlane.f32.xlu1 %v853_v1 }
 0x4dd   : > { %781 = vrot.lane.b32.xlu0 %v1732_v32, %s1570_s6  ;;  %s1247_s6 = sshll.u32 %s1630_s19, 4 }
 0x4e8   : > { %774 = vadd.xlane.f32.xlu2 %v773_v7 }
 0x4e9   : > { %v451_v8 = vpop.xlane.xlu1 %450 }
 0x4ea   : > { %1380 = vrcp.f32 %v451_v8  ;;  %861 = vrot.lane.b32.xlu1 %v1732_v32, %s1582_s14 }
 0x4eb   : > { %1382 = vpow2.f32 %v928_v15 }
 0x4f0   : > { %v1381_v56 = vpop.eup %1380 }
 0x4f1   : > { %v457_v11 = vmul.f32 %v1381_v56, %v1838_v19  ;;  %v1383_v16 = vpop.eup %1382 }
 0x4f2   : > { %v933_v20 = vsel %vm366_vm2, %v1383_v16, 0.0 }
 0x4f3   : > { %v459_v13 = vpack.c.bf16 %v458_v10, %v457_v11 }
 0x4f5   : > { %1194 = vmatmul.msk.bf16.vlgmr.msrb.gmra.mxu2 %vm366_vm2, %v459_v13 }
 0x500   : > { %941 = vrot.lane.b32.xlu2 %v1732_v32, %s1580_s30 }
 0x502   : > { %v556_v17 = vpop.f32.mrf.mxu1 }
 0x503   : > { %v561_v18 = vpack.c.bf16 %v556_v17, %v556_v17 }
 0x507   : > { %934 = vadd.xlane.f32.xlu0 %v933_v20 }
 0x508   : > { %565 = vrot.lane.b32.xlu2 %v561_v18, %s1571_s7 }
 0x50a   : > { %v558_v63 = vpop.f32.mrf.mxu1 }
 0x50b   : > { %v562_v19 = vpack.c.bf16 %v558_v63, %v558_v63 }
 0x51a   : > { %v612_v21 = vpop.xlane.xlu2 %611 }
 0x51b   : > { %567 = vrot.lane.b32.xlu0 %v562_v19, %s1571_s7  ;;  %1384 = vrcp.f32 %v612_v21  ;;  %v1246_v21 = vld [vmem:[#allocation8 + $0x18] sm:$0xff]  ;;  %s250_s7 = scalar_lea.vmem [#allocation9], %s1153_s5 }
 0x51c   : > { %1024 = vmatpush.bf16.msra.mxu0 %v1246_v21  ;;  %s1049_s11 = sshll.u32 %s250_s7, 4  ;;  %s1050_s11 = int_to_ptr.vmem [resolvable:$true] %s1049_s11 }
 0x521   : > { %v1385_v32 = vpop.eup %1384 }
 0x522   : > { %v702_v2 = vpop.permute.xlu2 %701  ;;  %v618_v24 = vmul.f32 %v1385_v32, %v1846_v35 }
 0x523   : > { %714 = vmatpush.bf16.msra.mxu1 %v702_v2  ;;  %v1245_v2 = vld [vmem:[#allocation8 + $0x10] sm:$0xff] }
 0x524   : > { %1025 = vmatpush.bf16.msra.mxu0 %v1245_v2 }
 0x526   : > { %1200 = vmatmul.msk.bf16.vlgmr.msra.gmra.mxu1 %vm366_vm2, %v700_v58 }
 0x52c   : > { %v615_v22 = vpop.xlane.xlu1 %614 }
 0x52d   : > { %1386 = vrcp.f32 %v615_v22 }
 0x533   : > { %v1387_v23 = vpop.eup %1386 }
 0x534   : > { %v619_v25 = vmul.f32 %v1387_v23, %v1852_v44  ;;  %v932_v27 = vpop.xlane.xlu1 %931  ;;  %v1244_v23 = vld [vmem:[#allocation8 + $0x8] sm:$0xff] }
 0x535   : > { %1026 = vmatpush.bf16.msra.mxu0 %v1244_v23 }
 0x536   : > { %v620_v26 = vpack.c.bf16 %v619_v25, %v618_v24  ;;  %v1243_v24 = vld [vmem:[#allocation8] sm:$0xff] }
 0x538   : > { %1198 = vmatmul.msk.bf16.vlgmr.msra.gmra.mxu2 %vm366_vm2, %v620_v26 }
 0x539   : > { %1027 = vmatpush.bf16.msra.mxu0 %v1243_v24 }
 0x53c   : > { %v852_v29 = vpop.xlane.xlu1 %851  ;;  %v772_v31 = vpop.xlane.xlu0 %771 }
 0x544   : > { %v855_v33 = vpop.xlane.xlu1 %854 }
 0x545   : > { %1388 = vrcp.f32 %v855_v33  ;;  %v1335_v33 = vld [vmem:[%s1959_s3] ss:$0 sm:$0xff] }
 0x546   : > { %1390 = vrcp.f32 %v852_v29 }
 0x547   : > { %1392 = vrcp.f32 %v772_v31 }
 0x54b   : > { %v1389_v36 = vpop.eup %1388 }
 0x54c   : > { %v1391_v37 = vpop.eup %1390  ;;  %v859_v38 = vmul.f32 %v1389_v36, %v1375_v0 }
 0x54d   : > { %v858_v35 = vmul.f32 %v1391_v37, %v1866_v61  ;;  %v1393_v43 = vpop.eup %1392 }
 0x54e   : > { %v778_v44 = vmul.f32 %v1393_v43, %v1868_v62 }
 0x54f   : > { %v782_v34 = vpop.permute.xlu0 %781  ;;  %v860_v42 = vpack.c.bf16 %v859_v38, %v858_v35 }
 0x550   : > { %794 = vmatpush.bf16.msrb.mxu2 %v782_v34 }
 0x55b   : > { %v775_v39 = vpop.xlane.xlu2 %774 }
 0x55c   : > { %1394 = vrcp.f32 %v775_v39  ;;  %v862_v41 = vpop.permute.xlu1 %861 }
 0x55d   : > { %874 = vmatpush.bf16.msrb.mxu1 %v862_v41  ;;  %1396 = vrcp.f32 %v932_v27 }
 0x560   : > { %1204 = vmatmul.msk.bf16.vlgmr.msrb.gmra.mxu1 %vm366_vm2, %v860_v42 }
 0x562   : > { %v1395_v40 = vpop.eup %1394 }
 0x563   : > { %v779_v45 = vmul.f32 %v1395_v40, %v1878_v5  ;;  %v942_v47 = vpop.permute.xlu2 %941  ;;  %v1397_v46 = vpop.eup %1396 }
 0x564   : > { %954 = vmatpush.bf16.msra.mxu2 %v942_v47  ;;  %v938_v51 = vmul.f32 %v1397_v46, %v1858_v55 }
 0x565   : > { %v780_v48 = vpack.c.bf16 %v779_v45, %v778_v44 }
 0x567   : > { %1202 = vmatmul.msk.bf16.vlgmr.msrb.gmra.mxu2 %vm366_vm2, %v780_v48 }
 0x56b   : > { %v566_v14 = vpop.permute.xlu2 %565 }
 0x578   : > { %v476_v59 = vpop.f32.mrf.mxu2 }
 0x579   : > { %v481_v1 = vpack.c.bf16 %v476_v59, %v476_v59 }
 0x57a   : > { %v935_v49 = vpop.xlane.xlu0 %934 }
 0x57b   : > { %1398 = vrcp.f32 %v935_v49 }
 0x580   : > { %v478_v61 = vpop.f32.mrf.mxu2 }
 0x581   : > { %v1399_v50 = vpop.eup %1398  ;;  %v482_v5 = vpack.c.bf16 %v478_v61, %v478_v61 }
 0x582   : > { %v939_v52 = vmul.f32 %v1399_v50, %v1383_v16 }
 0x584   : > { %v940_v57 = vpack.c.bf16 %v939_v52, %v938_v51 }
 0x586   : > { %1206 = vmatmul.msk.bf16.vlgmr.msra.gmra.mxu2 %vm366_vm2, %v940_v57 }
 0x58d   : > { %v568_v19 = vpop.permute.xlu0 %567 }
 0x5a3   : > { %v716_v58 = vpop.f32.mrf.mxu1 }
 0x5a4   : > { %v721_v28 = vpack.c.bf16 %v716_v58, %v716_v58 }
 0x5a6   : > { %725 = vrot.lane.b32.xlu1 %v721_v28, %s1579_s29 }
 0x5ab   : > { %v718_v60 = vpop.f32.mrf.mxu1 }
 0x5ac   : > { %v722_v54 = vpack.c.bf16 %v718_v60, %v718_v60 }
 0x5ae   : > { %727 = vrot.lane.b32.xlu2 %v722_v54, %s1579_s29 }
 0x5bb   : > { %v636_v62 = vpop.f32.mrf.mxu2 }
 0x5bc   : > { %v641_v53 = vpack.c.bf16 %v636_v62, %v636_v62 }
 0x5be   : > { %645 = vrot.lane.b32.xlu1 %v641_v53, %s1577_s25 }
 0x5c3   : > { %v638_v0 = vpop.f32.mrf.mxu2 }
 0x5c4   : > { %v642_v56 = vpack.c.bf16 %v638_v0, %v638_v0 }
 0x5dd   : > { %v876_v30 = vpop.f32.mrf.mxu1 }
 0x5de   : > { %v881_v55 = vpack.c.bf16 %v876_v30, %v876_v30 }
 0x5e0   : > { %885 = vrot.lane.b32.xlu2 %v881_v55, %s1574_s10 }
 0x5e5   : > { %v878_v6 = vpop.f32.mrf.mxu1 }
 0x5e6   : > { %v882_v8 = vpack.c.bf16 %v878_v6, %v878_v6 }
 0x5e8   : > { %485 = vrot.lane.b32.xlu2 %v481_v1, %s1578_s28 }
 0x5ea   : > { %v796_v3 = vpop.f32.mrf.mxu2 }
 0x5eb   : > { %v801_v4 = vpack.c.bf16 %v796_v3, %v796_v3 }
 0x5ed   : > { %805 = vrot.lane.b32.xlu1 %v801_v4, %s1573_s9 }
 0x5f0   : > { %487 = vrot.lane.b32.xlu2 %v482_v5, %s1578_s28 }
 0x5f2   : > { %v798_v7 = vpop.f32.mrf.mxu2 }
 0x5f3   : > { %v802_v9 = vpack.c.bf16 %v798_v7, %v798_v7 }
 0x5f5   : > { %807 = vrot.lane.b32.xlu0 %v802_v9, %s1573_s9  ;;  %887 = vrot.lane.b32.xlu1 %v882_v8, %s1574_s10  ;;  %s1048_s10 = scalar_lea.hbm %s1960_s4, %s1247_s6 }
 0x5f6   : > { %s1051_s27 = sshll.u32 %s1048_s10, 4  ;;  %s1052_s27 = int_to_ptr.hbm [resolvable:$true] %s1051_s27 }
 0x5f7   : > { %s1504_s29 = sshra.s32 %s1052_s27, 4  ;;  %s1505_s29 = int_to_ptr.hbm [resolvable:$true] %s1504_s29 }
 0x5f8   : > { %647 = vrot.lane.b32.xlu2 %v642_v56, %s1577_s25  ;;  %s1037_s25 = scalar_lea.sflag [#allocation5], %s1711_s24  ;;  %s1506_s19 = scalar_lea.hbm %s1505_s29, 16 }
 0x5f9   : > { %p1507_p1 = scmp.ne.s32.totalorder %s1505_s29, %s1506_s19  ;;  %p1511_p11 = scmp.lt.s32.totalorder %s1505_s29, %s1960_s4 }
 0x5fa   : > { %p1512_p9 = scmp.lt.s32.totalorder %s1510_s13, %s1506_s19 }
 0x5fb   : > { %p1508_p4 = pnand %p1507_p1, %p1681_p5 }
 0x5fc   : > { %p1513_p2 = por %p1512_p9, %p1511_p11 }
 0x5fd   : > { %p1509_p8 = pneg %p1508_p4 }
 0x5ff   : > { %p1514_p10 = pnand %p1513_p2, %p1509_p8 }
 0x608   : > { %v728_v15 = vpop.permute.xlu2 %727 }
 0x609   : > { %v956_v10 = vpop.f32.mrf.mxu2 }
 0x60a   : > { %v961_v11 = vpack.c.bf16 %v956_v10, %v956_v10 }
 0x60c   : > { %965 = vrot.lane.b32.xlu0 %v961_v11, %s1568_s21 }
 0x611   : > { %v958_v12 = vpop.f32.mrf.mxu2 }
 0x612   : > { %v962_v13 = vpack.c.bf16 %v958_v12, %v958_v12 }
 0x614   : > { %967 = vrot.lane.b32.xlu2 %v962_v13, %s1568_s21 }
 0x618   : > { %v726_v17 = vpop.permute.xlu1 %725 }
 0x630   : > { %v646_v20 = vpop.permute.xlu1 %645 }
 0x63a   : > { %v886_v16 = vpop.permute.xlu2 %885 }
 0x642   : > { %v486_v18 = vpop.permute.xlu2 %485 }
 0x643   : > { %492 = vst.msk [vmem:[#allocation2] sm:$0xf] %vm491_vm4, %v486_v18 }
 0x644   : > { %572 = vst.msk [vmem:[#allocation2] sm:$0xf] %vm571_vm5, %v566_v14 }
 0x645   : > { %652 = vst.msk [vmem:[#allocation2] sm:$0xf] %vm651_vm6, %v646_v20 }
 0x646   : > { %732 = vst.msk [vmem:[#allocation2] sm:$0xf] %vm731_vm7, %v726_v17 }
 0x64a   : > { %v488_v63 = vpop.permute.xlu2 %487 }
 0x64b   : > { %493 = vst.msk [vmem:[#allocation2 + $0x4] sm:$0xf] %vm491_vm4, %v488_v63 }
 0x64c   : > { %573 = vst.msk [vmem:[#allocation2 + $0x4] sm:$0xf] %vm571_vm5, %v568_v19 }
 0x652   : > { %v648_v22 = vpop.permute.xlu2 %647 }
 0x653   : > { %653 = vst.msk [vmem:[#allocation2 + $0x4] sm:$0xf] %vm651_vm6, %v648_v22 }
 0x654   : > { %733 = vst.msk [vmem:[#allocation2 + $0x4] sm:$0xf] %vm731_vm7, %v728_v15 }
 0x65f   : > { %v806_v32 = vpop.permute.xlu1 %805 }
 0x660   : > { %812 = vst.msk [vmem:[#allocation2] sm:$0xf] %vm811_vm8, %v806_v32 }
 0x661   : > { %892 = vst.msk [vmem:[#allocation2] sm:$0xf] %vm891_vm9, %v886_v16 }
 0x667   : > { %v808_v25 = vpop.permute.xlu0 %807  ;;  %v888_v26 = vpop.permute.xlu1 %887 }
 0x668   : > { %813 = vst.msk [vmem:[#allocation2 + $0x4] sm:$0xf] %vm811_vm8, %v808_v25 }
 0x669   : > { %893 = vst.msk [vmem:[#allocation2 + $0x4] sm:$0xf] %vm891_vm9, %v888_v26 }
 0x66e   : > { %v968_v27 = vpop.permute.xlu2 %967 }
 0x66f   : > { %973 = vst.msk [vmem:[#allocation2 + $0x4] sm:$0xf] %vm971_vm10, %v968_v27 }
 0x67e   : > { %v966_v29 = vpop.permute.xlu0 %965 }
 0x67f   : > { %972 = vst.msk [vmem:[#allocation2] sm:$0xf] %vm971_vm10, %v966_v29 }
 0x686   : > { %v1242_v31 = vld [vmem:[#allocation2] sm:$0xff] }
 0x687   : > { %1227 = vmatmul.msk.bf16.vlgmr.msra.gmra.mxu0 %vm305_vm0, %v1242_v31 }
 0x704   : > { %v1029_v34 = vpop.f32.mrf.mxu0 }
 0x705   : > { %v1030_v36 = vadd.f32 %v1335_v33, %v1029_v34 }
 0x707   : > { %1034 = vst [vmem:[%s250_s7] sm:$0xff] %v1030_v36 }
 0x70c   : > { %v1031_v37 = vpop.f32.mrf.mxu0 }
 0x70d   : > { %v1032_v38 = vadd.f32 %v1335_v33, %v1031_v37 }
 0x70f   : > { %1035 = vst [vmem:[%s250_s7 + $0x8] sm:$0xff] %v1032_v38 }
 0x710   : > { %1517 = shalt.err (!%p1514_p10)
}
 0x711   : > { %s1583_s24 = smov 128  }
 0x712   : > { %1258 = dma.vmem_to_hbm [thread:$0]  (%p1681_p5), %s1050_s11, 256, %s1052_s27, %s1037_s25, %s1583_s24, %s1583_s24, %s1578_s28  }
 0x713 PF: > { %s1066_s26 = sand.u32 1, %s1548_s15   ;;  %p1966_p12 = scmp.ge.s32.totalorder %s1560_s18, 2 }
 0x714   : > { %s1067_s6 = scalar_lea.sflag [#allocation5], %s1066_s26 }
 0x715   : > { %p1272_p13 = pnand %p1966_p12, %p1644_p6 }
 0x717   : > { %p1273_p0 = pneg %p1272_p13 }
 0x719   : > { %1543 = dma.done.wait (%p1273_p0), %s1067_s6, 256  }
 0x71a   : > { %1545 = vsyncadd (%p1273_p0), %s1067_s6, 4294967040  ;;  %p18_p3 = scmp.ge.s32.totalorder %s1668_s12, 4   ;;  %s1967_s15 = smov %s1552_s16 }
 0x71b   : > { %s1968_s16 = smov %s1556_s17  ;;  %s1969_s17 = smov %s1677_s20 }
 0x71c   : > { %s1970_s18 = smov %s1668_s12  ;;  %20 = sbr.rel (!%p18_p3) target bundleno = 6 (0x6), region = 89 }
 0x721   :  { %1073 = vsyncpa [#allocation4], 1 }
 0x722   :  { %1075 = vsyncpa [#allocation4 + $0x1], 1 }
 0x723   :  { %1076 = vsyncpa [#allocation7], 1 }
 0x724   :  { %1077 = vsyncpa [#allocation5], 1 }
 0x725   :  { %1079 = vsyncpa [#allocation5 + $0x1], 1 }

</bundles_post_ra>
